<compile_context>
chip_gen: v6e
topology: v6e:2x2x1
jax: 0.10.0
libtpu: 0.0.40
codegen_flags: <defaults>
</compile_context>

<pallas_src>
import functools

import jax
import jax.numpy as jnp
from jax.experimental import pallas as pl
from jax.experimental.pallas import tpu as pltpu


_VMEM_LIMIT = 64 * 1024 * 1024   # explicit scoped-VMEM budget (fits v7x physical 64 MiB)
_NEG_INIT = -1e30                # finite "-inf" init so exp() never produces NaN
_MASK_VAL = -1e9                 # matches torch masked_fill(mask == 0, -1e9)


def _row_tile(m, cap=256):
    """Fixed row tile: full dim if small, else 256 (pl.cdiv handles the remainder)."""
    return m if m <= cap else cap


def _col_tile(n, cap=512):
    """Output-feature tile: full dim if small, else 512 (multiple of 256 for the MXU)."""
    return n if n <= cap else cap


# ----------------------------- Pallas kernels -------------------------------

def _linear_kernel(x_ref, w_ref, b_ref, o_ref, *, relu):
    # bf16 operands, f32 accumulation.
    y = jnp.dot(x_ref[...].astype(jnp.bfloat16), w_ref[...].astype(jnp.bfloat16),
                preferred_element_type=jnp.float32) + b_ref[...]
    if relu:
        y = jnp.maximum(y, 0.0)
    o_ref[...] = y.astype(o_ref.dtype)


def _fused_proj_kernel(x_ref, w_ref, b_ref, *o_refs, widths):
    # One matmul against the concatenated projection weight, result split into
    # separate lane-dense outputs (q/k/v or k/v) inside the kernel.
    y = jnp.dot(x_ref[...].astype(jnp.bfloat16), w_ref[...].astype(jnp.bfloat16),
                preferred_element_type=jnp.float32) + b_ref[...]
    off = 0
    for o_ref, wd in zip(o_refs, widths):
        o_ref[...] = y[:, off:off + wd].astype(o_ref.dtype)
        off += wd


def _linear_add_ln_kernel(x_ref, w_ref, b_ref, res_ref, g_ref, beta_ref, o_ref, *, eps):
    # Fused: (x @ w + b) + residual, then LayerNorm over the feature axis (f32).
    y = jnp.dot(x_ref[...].astype(jnp.bfloat16), w_ref[...].astype(jnp.bfloat16),
                preferred_element_type=jnp.float32) + b_ref[...]
    z = y + res_ref[...]
    mu = jnp.mean(z, axis=-1, keepdims=True)
    zc = z - mu
    var = jnp.mean(zc * zc, axis=-1, keepdims=True)
    o_ref[...] = (zc * jax.lax.rsqrt(var + eps) * g_ref[...]
                  + beta_ref[...]).astype(o_ref.dtype)


def _flash_attn_kernel(q_ref, k_ref, v_ref, mask_ref, o_ref,
                       m_ref, l_ref, acc_ref, *, n_head, scale, sk_total, tk):
    # Blocks: q (1,tq,D), k/v (1,tk,D), mask (1,tq,tk), out (1,tq,D).
    # Grid axes: (batch, q-tile, kv-tile); kv-tile is the "arbitrary" reduction axis.
    ki = pl.program_id(2)

    @pl.when(ki == 0)
    def _init():
        m_ref[...] = jnp.full(m_ref.shape, _NEG_INIT, jnp.float32)
        l_ref[...] = jnp.zeros(l_ref.shape, jnp.float32)
        acc_ref[...] = jnp.zeros(acc_ref.shape, jnp.float32)

    tq_blk = q_ref.shape[1]
    tk_blk = k_ref.shape[1]
    d_model = q_ref.shape[2]
    dh = d_model // n_head

    q_full = q_ref[0]                                   # [tq, D] bf16
    k_full = k_ref[0]                                   # [tk, D] bf16
    v_full = v_ref[0]                                   # [tk, D] bf16

    # Keep-mask: user mask != 0 AND the column is a real (non grid-padding) KV position.
    mask = mask_ref[0]                                  # [tq, tk]
    col = ki * tk + jax.lax.broadcasted_iota(jnp.int32, (tq_blk, tk_blk), 1)
    keep = jnp.logical_and(mask != 0, col < sk_total)   # [tq, tk] bool

    for h in range(n_head):                             # static unroll over heads
        q_h = q_full[:, h * dh:(h + 1) * dh]            # [tq, dh]
        k_h = k_full[:, h * dh:(h + 1) * dh]            # [tk, dh]
        v_h = v_full[:, h * dh:(h + 1) * dh]            # [tk, dh]

        # scores, contracting the stored dh axis (no k transpose); replace (not add)
        # masked entries with -1e9, exactly like masked_fill in the reference.
        s = jax.lax.dot_general(q_h, k_h, (((1,), (1,)), ((), ())),
                                preferred_element_type=jnp.float32) * scale
        s = jnp.where(keep, s, _MASK_VAL)               # [tq, tk] f32

        m_prev = m_ref[h]                                # [tq, 1]
        m_new = jnp.maximum(m_prev, jnp.max(s, axis=-1, keepdims=True))
        alpha = jnp.exp(m_prev - m_new)                  # [tq, 1]
        p = jnp.exp(s - m_new)                           # [tq, tk]
        l_ref[h] = alpha * l_ref[h] + jnp.sum(p, axis=-1, keepdims=True)
        m_ref[h] = m_new
        acc_ref[h] = alpha * acc_ref[h] + jnp.dot(
            p.astype(v_h.dtype), v_h, preferred_element_type=jnp.float32)

    @pl.when(ki == pl.num_programs(2) - 1)
    def _finalize():
        # Write all heads into one lane-dense [tq, D] output block (single HBM store).
        for h in range(n_head):
            inv_l = pl.reciprocal(l_ref[h], approx=True)   # EUP slot, ~free
            o_ref[0, :, h * dh:(h + 1) * dh] = (acc_ref[h] * inv_l).astype(o_ref.dtype)


# ----------------------------- Pallas wrappers -------------------------------

def pallas_linear(x, w, b, *, relu=False, out_dtype=jnp.float32):
    """out = x @ w + b (optional ReLU); row- and output-feature-tiled."""
    M, K = x.shape
    N = w.shape[1]
    tm = _row_tile(M)
    tn = _col_tile(N)
    return pl.pallas_call(
        functools.partial(_linear_kernel, relu=relu),
        out_shape=jax.ShapeDtypeStruct((M, N), out_dtype),
        grid=(pl.cdiv(M, tm), pl.cdiv(N, tn)),
        in_specs=[
            pl.BlockSpec((tm, K), lambda i, j: (i, 0)),
            pl.BlockSpec((K, tn), lambda i, j: (0, j)),
            pl.BlockSpec((1, tn), lambda i, j: (0, j)),
        ],
        out_specs=pl.BlockSpec((tm, tn), lambda i, j: (i, j)),
        compiler_params=pltpu.CompilerParams(
            dimension_semantics=("parallel", "parallel"),
            vmem_limit_bytes=_VMEM_LIMIT),
    )(x, w, b.reshape(1, N))


def pallas_fused_proj(x, w, b, widths, out_dtype=jnp.bfloat16):
    """Single matmul against the concatenated projection weight, split outputs."""
    M, K = x.shape
    N = w.shape[1]
    tm = _row_tile(M)
    widths = tuple(widths)
    return pl.pallas_call(
        functools.partial(_fused_proj_kernel, widths=widths),
        out_shape=tuple(jax.ShapeDtypeStruct((M, wd), out_dtype) for wd in widths),
        grid=(pl.cdiv(M, tm),),
        in_specs=[
            pl.BlockSpec((tm, K), lambda i: (i, 0)),
            pl.BlockSpec((K, N), lambda i: (0, 0)),
            pl.BlockSpec((1, N), lambda i: (0, 0)),
        ],
        out_specs=tuple(pl.BlockSpec((tm, wd), lambda i: (i, 0)) for wd in widths),
        compiler_params=pltpu.CompilerParams(
            dimension_semantics=("parallel",),
            vmem_limit_bytes=_VMEM_LIMIT),
    )(x, w, b.reshape(1, N))


def pallas_linear_add_ln(x, w, b, res, gamma, beta, *, eps=1e-5):
    """out = LayerNorm((x @ w + b) + res) — matmul with fused add&norm epilogue."""
    M, K = x.shape
    N = w.shape[1]
    tm = _row_tile(M)
    return pl.pallas_call(
        functools.partial(_linear_add_ln_kernel, eps=eps),
        out_shape=jax.ShapeDtypeStruct((M, N), jnp.float32),
        grid=(pl.cdiv(M, tm),),
        in_specs=[
            pl.BlockSpec((tm, K), lambda i: (i, 0)),
            pl.BlockSpec((K, N), lambda i: (0, 0)),
            pl.BlockSpec((1, N), lambda i: (0, 0)),
            pl.BlockSpec((tm, N), lambda i: (i, 0)),
            pl.BlockSpec((1, N), lambda i: (0, 0)),
            pl.BlockSpec((1, N), lambda i: (0, 0)),
        ],
        out_specs=pl.BlockSpec((tm, N), lambda i: (i, 0)),
        compiler_params=pltpu.CompilerParams(
            dimension_semantics=("parallel",),
            vmem_limit_bytes=_VMEM_LIMIT),
    )(x, w, b.reshape(1, N), res, gamma.reshape(1, N), beta.reshape(1, N))


def pallas_flash_attention(q, k, v, mask, n_head, *, scale):
    """q: [B,Sq,D], k/v: [B,Sk,D] (bf16), mask: [B,Sq,Sk] (nonzero = attend)."""
    B, Sq, D = q.shape
    Sk = k.shape[1]
    dh = D // n_head
    tq = _row_tile(Sq, 256)
    tk = Sk if Sk <= 512 else 512      # multiple of 128 when tiling (mask's lane dim)
    return pl.pallas_call(
        functools.partial(_flash_attn_kernel, n_head=n_head, scale=scale,
                          sk_total=Sk, tk=tk),
        out_shape=jax.ShapeDtypeStruct((B, Sq, D), q.dtype),
        grid=(B, pl.cdiv(Sq, tq), pl.cdiv(Sk, tk)),
        in_specs=[
            pl.BlockSpec((1, tq, D), lambda b, qi, ki: (b, qi, 0)),
            pl.BlockSpec((1, tk, D), lambda b, qi, ki: (b, ki, 0)),
            pl.BlockSpec((1, tk, D), lambda b, qi, ki: (b, ki, 0)),
            pl.BlockSpec((1, tq, tk), lambda b, qi, ki: (b, qi, ki)),
        ],
        out_specs=pl.BlockSpec((1, tq, D), lambda b, qi, ki: (b, qi, 0)),
        scratch_shapes=[
            pltpu.VMEM((n_head, tq, 1), jnp.float32),    # running max  m
            pltpu.VMEM((n_head, tq, 1), jnp.float32),    # running sum  l
            pltpu.VMEM((n_head, tq, dh), jnp.float32),   # accumulator
        ],
        compiler_params=pltpu.CompilerParams(
            dimension_semantics=("parallel", "parallel", "arbitrary"),
            vmem_limit_bytes=_VMEM_LIMIT),
    )(q, k, v, mask)


# ----------------------------- Module pieces ---------------------------------

def self_attention_block(p, x, mask, n_head, ln_g, ln_b):
    """Masked self-attention: fused QKV projection, flash attention, fused add&LN."""
    B, S, D = x.shape
    dh = D // n_head
    x2d = x.reshape(B * S, D)
    q2d, k2d, v2d = pallas_fused_proj(x2d, p["wqkv"], p["bqkv"], (D, D, D))
    attn = pallas_flash_attention(q2d.reshape(B, S, D), k2d.reshape(B, S, D),
                                  v2d.reshape(B, S, D), mask, n_head,
                                  scale=float(dh) ** -0.5)
    out = pallas_linear_add_ln(attn.reshape(B * S, D), p["wo"], p["bo"],
                               x2d, ln_g, ln_b)
    return out.reshape(B, S, D)


def cross_attention_block(p, xq, xkv, mask, n_head, ln_g, ln_b):
    """Cross-attention: Q from decoder stream, fused KV projection of ec_out."""
    B, Sq, D = xq.shape
    Sk = xkv.shape[1]
    dh = D // n_head
    xq2d = xq.reshape(B * Sq, D)
    xkv2d = xkv.reshape(B * Sk, D)
    q2d = pallas_linear(xq2d, p["wq"], p["bq"], out_dtype=jnp.bfloat16)
    k2d, v2d = pallas_fused_proj(xkv2d, p["wkv"], p["bkv"], (D, D))
    attn = pallas_flash_attention(q2d.reshape(B, Sq, D), k2d.reshape(B, Sk, D),
                                  v2d.reshape(B, Sk, D), mask, n_head,
                                  scale=float(dh) ** -0.5)
    out = pallas_linear_add_ln(attn.reshape(B * Sq, D), p["wo"], p["bo"],
                               xq2d, ln_g, ln_b)
    return out.reshape(B, Sq, D)


def feed_forward(p, x, ln_g, ln_b):
    """Linear -> ReLU -> Linear, with residual(x) + LayerNorm fused into w2."""
    B, S, D = x.shape
    x2d = x.reshape(B * S, D)
    h = pallas_linear(x2d, p["w1"], p["b1"], relu=True, out_dtype=jnp.bfloat16)
    y = pallas_linear_add_ln(h, p["w2"], p["b2"], x2d, ln_g, ln_b)
    return y.reshape(B, S, D)


def decoder_layer(params, dc_inp, ec_out, src_mask, tgt_mask, n_head):
    x = dc_inp.astype(jnp.float32)
    ec = ec_out.astype(jnp.float32)
    # masked self-attention + add&norm (shared norm params, as in the module)
    m_out = self_attention_block(params["masked_attn"], x, tgt_mask, n_head,
                                 params["ln_g"], params["ln_b"])
    # cross-attention + add&norm
    a_out = cross_attention_block(params["attn"], m_out, ec, src_mask, n_head,
                                  params["ln_g"], params["ln_b"])
    # feed-forward + add&norm
    f_out = feed_forward(params["ff"], a_out, params["ln_g"], params["ln_b"])
    # TODO(synk): nn.Dropout is identity at inference; training-mode dropout not implemented.
    return f_out


# ----------------------------- Param init ------------------------------------

def init_params(key, d_model, d_ff):
    keys = jax.random.split(key, 10)
    s = 0.02

    def lin(kw, din, dout):
        w = (jax.random.normal(kw, (din, dout), jnp.float32) * s).astype(jnp.bfloat16)
        return w, jnp.zeros((dout,), jnp.float32)

    def mha_self(k0, k1, k2, k3):
        wq, bq = lin(k0, d_model, d_model)
        wk, bk = lin(k1, d_model, d_model)
        wv, bv = lin(k2, d_model, d_model)
        wo, bo = lin(k3, d_model, d_model)
        return dict(wqkv=jnp.concatenate([wq, wk, wv], axis=1),
                    bqkv=jnp.concatenate([bq, bk, bv], axis=0),
                    wo=wo, bo=bo)

    def mha_cross(k0, k1, k2, k3):
        wq, bq = lin(k0, d_model, d_model)
        wk, bk = lin(k1, d_model, d_model)
        wv, bv = lin(k2, d_model, d_model)
        wo, bo = lin(k3, d_model, d_model)
        return dict(wq=wq, bq=bq,
                    wkv=jnp.concatenate([wk, wv], axis=1),
                    bkv=jnp.concatenate([bk, bv], axis=0),
                    wo=wo, bo=bo)

    w1, b1 = lin(keys[8], d_model, d_ff)
    w2, b2 = lin(keys[9], d_ff, d_model)
    return {
        "masked_attn": mha_self(keys[0], keys[1], keys[2], keys[3]),
        "attn": mha_cross(keys[4], keys[5], keys[6], keys[7]),
        "ff": dict(w1=w1, b1=b1, w2=w2, b2=b2),
        "ln_g": jnp.ones((d_model,), jnp.float32),
        "ln_b": jnp.zeros((d_model,), jnp.float32),
    }


# ----------------------------- Main -------------------------------------------

if __name__ == "__main__":
    d_model, d_ff, n_head = 32, 64, 4
    B, tgt_len, src_len = 2, 8, 8

    key = jax.random.PRNGKey(0)
    k_p, k_x, k_e = jax.random.split(key, 3)

    params = init_params(k_p, d_model, d_ff)
    dc_inp = jax.random.normal(k_x, (B, tgt_len, d_model), jnp.float32)
    ec_out = jax.random.normal(k_e, (B, src_len, d_model), jnp.float32)

    # src_mask: all positions visible; tgt_mask: causal lower-triangular.
    src_mask = jnp.ones((B, tgt_len, src_len), jnp.float32)
    tgt_mask = jnp.tril(jnp.ones((tgt_len, tgt_len), jnp.float32))[None].repeat(B, axis=0)

    out = decoder_layer(params, dc_inp, ec_out, src_mask, tgt_mask, n_head)
    jax.block_until_ready(out)

    assert out.shape == (B, tgt_len, d_model)
    assert bool(jnp.all(jnp.isfinite(out)))
    print("KERNEL_OK")
</pallas_src>

<mosaic_0001>
module attributes {stable_mosaic.version = 11 : i64} {
  func.func @_fused_proj_kernel(%arg0: i32, %arg1: memref<16x32xf32, #tpu.memory_space<vmem>>, %arg2: memref<32x96xbf16, #tpu.memory_space<vmem>>, %arg3: memref<1x96xf32, #tpu.memory_space<vmem>>, %arg4: memref<16x32xbf16, #tpu.memory_space<vmem>>, %arg5: memref<16x32xbf16, #tpu.memory_space<vmem>>, %arg6: memref<16x32xbf16, #tpu.memory_space<vmem>>) attributes {dimension_semantics = [#tpu.dimension_semantics<parallel>], iteration_bounds = array<i64: 1>, scalar_prefetch = 0 : i64, scratch_operands = 0 : i64, tpu.core_type = #tpu.core_type<tc>, window_params = [{transform_indices = @transform_0, window_bounds = array<i64: 16, 32>}, {pipeline_mode = #tpu.pipeline_mode<synchronous>, transform_indices = @transform_1, window_bounds = array<i64: 32, 96>}, {pipeline_mode = #tpu.pipeline_mode<synchronous>, transform_indices = @transform_2, window_bounds = array<i64: 1, 96>}, {transform_indices = @transform_3, window_bounds = array<i64: 16, 32>}, {transform_indices = @transform_4, window_bounds = array<i64: 16, 32>}, {transform_indices = @transform_5, window_bounds = array<i64: 16, 32>}]} {
    %c0 = arith.constant 0 : index
    %c0_0 = arith.constant 0 : index
    %0 = vector.load %arg1[%c0, %c0_0] : memref<16x32xf32, #tpu.memory_space<vmem>>, vector<16x32xf32>
    %1 = arith.truncf %0 : vector<16x32xf32> to vector<16x32xbf16>
    %c0_1 = arith.constant 0 : index
    %c0_2 = arith.constant 0 : index
    %2 = vector.load %arg2[%c0_1, %c0_2] : memref<32x96xbf16, #tpu.memory_space<vmem>>, vector<32x96xbf16>
    %cst = arith.constant dense<0.000000e+00> : vector<16x96xf32>
    %3 = tpu.matmul %1, %2, %cst {dimension_numbers = #tpu.dot_dimension_numbers<[1], [0], [0], [1], [0, 0, 1, 1], [], []>} : vector<16x32xbf16>, vector<32x96xbf16>, vector<16x96xf32> -> vector<16x96xf32>
    %c0_3 = arith.constant 0 : index
    %c0_4 = arith.constant 0 : index
    %4 = vector.load %arg3[%c0_3, %c0_4] : memref<1x96xf32, #tpu.memory_space<vmem>>, vector<1x96xf32>
    %5 = vector.broadcast %4 : vector<1x96xf32> to vector<16x96xf32>
    %6 = arith.addf %3, %5 : vector<16x96xf32>
    %7 = vector.extract_strided_slice %6 {offsets = [0, 0], sizes = [16, 32], strides = [1, 1]} : vector<16x96xf32> to vector<16x32xf32>
    %8 = arith.truncf %7 : vector<16x32xf32> to vector<16x32xbf16>
    %c0_5 = arith.constant 0 : index
    %c0_6 = arith.constant 0 : index
    %9 = vector.load %arg4[%c0_5, %c0_6] : memref<16x32xbf16, #tpu.memory_space<vmem>>, vector<16x32xbf16>
    tpu.vector_store %arg4[%c0_5, %c0_6], %8 {strides = array<i32>} : memref<16x32xbf16, #tpu.memory_space<vmem>>, vector<16x32xbf16>,
    %10 = vector.extract_strided_slice %6 {offsets = [0, 32], sizes = [16, 32], strides = [1, 1]} : vector<16x96xf32> to vector<16x32xf32>
    %11 = arith.truncf %10 : vector<16x32xf32> to vector<16x32xbf16>
    %c0_7 = arith.constant 0 : index
    %c0_8 = arith.constant 0 : index
    %12 = vector.load %arg5[%c0_7, %c0_8] : memref<16x32xbf16, #tpu.memory_space<vmem>>, vector<16x32xbf16>
    tpu.vector_store %arg5[%c0_7, %c0_8], %11 {strides = array<i32>} : memref<16x32xbf16, #tpu.memory_space<vmem>>, vector<16x32xbf16>,
    %13 = vector.extract_strided_slice %6 {offsets = [0, 64], sizes = [16, 32], strides = [1, 1]} : vector<16x96xf32> to vector<16x32xf32>
    %14 = arith.truncf %13 : vector<16x32xf32> to vector<16x32xbf16>
    %c0_9 = arith.constant 0 : index
    %c0_10 = arith.constant 0 : index
    %15 = vector.load %arg6[%c0_9, %c0_10] : memref<16x32xbf16, #tpu.memory_space<vmem>>, vector<16x32xbf16>
    tpu.vector_store %arg6[%c0_9, %c0_10], %14 {strides = array<i32>} : memref<16x32xbf16, #tpu.memory_space<vmem>>, vector<16x32xbf16>,
    return
  }
  func.func @transform_0(%arg0: i32) -> (i32, i32) {
    %c0_i32 = arith.constant 0 : i32
    %c0_i32_0 = arith.constant 0 : i32
    return %arg0, %c0_i32 : i32, i32
  }
  func.func @transform_1(%arg0: i32) -> (i32, i32) {
    %c0_i32 = arith.constant 0 : i32
    %c0_i32_0 = arith.constant 0 : i32
    %c0_i32_1 = arith.constant 0 : i32
    return %c0_i32, %c0_i32_0 : i32, i32
  }
  func.func @transform_2(%arg0: i32) -> (i32, i32) {
    %c0_i32 = arith.constant 0 : i32
    %c0_i32_0 = arith.constant 0 : i32
    %c0_i32_1 = arith.constant 0 : i32
    return %c0_i32, %c0_i32_0 : i32, i32
  }
  func.func @transform_3(%arg0: i32) -> (i32, i32) {
    %c0_i32 = arith.constant 0 : i32
    %c0_i32_0 = arith.constant 0 : i32
    return %arg0, %c0_i32 : i32, i32
  }
  func.func @transform_4(%arg0: i32) -> (i32, i32) {
    %c0_i32 = arith.constant 0 : i32
    %c0_i32_0 = arith.constant 0 : i32
    return %arg0, %c0_i32 : i32, i32
  }
  func.func @transform_5(%arg0: i32) -> (i32, i32) {
    %c0_i32 = arith.constant 0 : i32
    %c0_i32_0 = arith.constant 0 : i32
    return %arg0, %c0_i32 : i32, i32
  }
}

</mosaic_0001>

<bundles_post_ra>
// kernel: tpu_custom_call.1
= control target key start
LH: loop header
LB: loop body
LE: loop exit
PB: predicated region body
PF: predicated region fallthrough
CT: control target
= control target key end

     0   :  { %11 = vsyncpa [#allocation3], 0  ;;  %s416_s0 = inlined_call_operand.hbm [shape: f32[16,32], index: 0, kind: input, shape index: {}]   ;;  %s417_s1 = inlined_call_operand.hbm [shape: bf16[32,96], index: 1, kind: input, shape index: {}]   ;;  %s418_s2 = inlined_call_operand.vmem [shape: f32[1,96], index: 2, kind: input, shape index: {}]   ;;  %s419_s3 = inlined_call_operand.hbm [shape: bf16[16,32], index: 3, kind: output, shape index: {0}]   ;;  %s420_s4 = inlined_call_operand.hbm [shape: bf16[16,32], index: 4, kind: output, shape index: {1}]   ;;  %s421_s5 = inlined_call_operand.hbm [shape: bf16[16,32], index: 5, kind: output, shape index: {2}]  }
   0x1   :  { %12 = vsyncpa [#allocation6], 0 }
   0x2   :  { %13 = vsyncpa [#allocation4], 0 }
   0x3   :  { %14 = vsyncpa [#allocation9], 0  ;;  %s336_s18 = smov [#allocation2]  }
   0x4   :  { %s20_s19 = sshll.u32 %s336_s18, 4  ;;  %s21_s19 = int_to_ptr.vmem [resolvable:$true] %s20_s19 }
   0x5   :  { %s236_s20 = scalar_lea.vmem %s21_s19, 256  ;;  %p241_p1 = scmp.lt.s32.totalorder %s21_s19, %s21_s19 }
   0x6   :  { %p237_p0 = scmp.ne.s32.totalorder %s21_s19, %s236_s20  ;;  %p242_p2 = scmp.lt.s32.totalorder %s236_s20, %s236_s20 }
   0x8   :  { %p243_p3 = por %p242_p2, %p241_p1 }
   0xa   :  { %p244_p4 = pnand %p243_p3, %p237_p0 }
   0xc   :  { %247 = shalt.err (!%p244_p4)
}
   0xd   :  { %s337_s21 = smov 128   ;;  %s338_s22 = smov 8  }
   0xe   :  { %26 = dma.hbm_to_vmem [thread:$0]  %s416_s0, 256, %s21_s19, [#allocation3], %s337_s21, %s337_s21, %s338_s22  }
   0xf   :  { %s339_s25 = smov [#allocation5]  }
  0x10   :  { %s32_s26 = sshll.u32 %s339_s25, 4  ;;  %s33_s26 = int_to_ptr.vmem [resolvable:$true] %s32_s26 }
  0x11   :  { %s256_s27 = scalar_lea.vmem %s33_s26, 256  ;;  %p261_p6 = scmp.lt.s32.totalorder %s33_s26, %s33_s26 }
  0x12   :  { %p257_p5 = scmp.ne.s32.totalorder %s33_s26, %s256_s27  ;;  %p262_p7 = scmp.lt.s32.totalorder %s256_s27, %s256_s27 }
  0x14   :  { %p263_p8 = por %p262_p7, %p261_p6 }
  0x16   :  { %p264_p9 = pnand %p263_p8, %p257_p5 }
  0x18   :  { %267 = shalt.err (!%p264_p9)
}
  0x19   :  { %s340_s28 = smov 64   ;;  %s341_s29 = smov 4  }
  0x1a   :  { %38 = dma.hbm_to_vmem [thread:$0]  %s417_s1, 256, %s33_s26, [#allocation6], %s340_s28, %s340_s28, %s341_s29  }
  0x1b   :  { %328 = dma.done.wait [#allocation3], 256  }
  0x1c   :  { %329 = vsyncadd [#allocation3], 4294967040 }
  0x1d   :  { %330 = dma.done.wait [#allocation6], 256  }
  0x1e   :  { %331 = vsyncadd [#allocation6], 4294967040  ;;  %v342_v0 = vmov 0.0   ;;  %vm343_vm0 = vmmov 0   ;;  %v226_v1 = vld [vmem:[#allocation5 + $0x8] sm:$0xff]   ;;  %v227_v2 = vld [vmem:[#allocation5] sm:$0xff]  }
  0x1f   :  { %206 = vmatprep.subr.bf16.mxu0 %v342_v0  ;;  %210 = vmatprep.mubr.msk.bf16.mxu0 %vm343_vm0, %v342_v0  ;;  %v48_v3 = vld [vmem:[#allocation2] sm:$0xff]  ;;  %v49_v4 = vld [vmem:[#allocation2 + $0x8] sm:$0xff]  ;;  %vm74_vm1 = vcmask 261120   ;;  %vm127_vm2 = vcmask 257024   ;;  %s344_s7 = smov [#allocation7]   ;;  %s345_s9 = smov 96  }
  0x20   :  { %207 = vmatpush3.bf16.msra.mxu0 %v226_v1  ;;  %v50_v5 = vpack.c.bf16 %v49_v4, %v48_v3  ;;  %v195_v6 = vld [vmem:[%s418_s2] ss:$0 sm:$0xff]  ;;  %s151_s8 = sshll.u32 %s344_s7, 4  ;;  %s152_s8 = int_to_ptr.vmem [resolvable:$true] %s151_s8 }
  0x21   :  { %208 = vmatprep.subr.bf16.mxu0 %v342_v0  ;;  %s268_s2 = scalar_lea.vmem %s152_s8, 128  ;;  %p273_p11 = scmp.lt.s32.totalorder %s152_s8, %s152_s8 }
  0x22   :  { %p269_p10 = scmp.ne.s32.totalorder %s152_s8, %s268_s2  ;;  %p274_p12 = scmp.lt.s32.totalorder %s268_s2, %s268_s2 }
  0x24   :  { %209 = vmatpush3.bf16.msra.mxu0 %v227_v2  ;;  %p275_p13 = por %p274_p12, %p273_p11 }
  0x26   :  { %p276_p0 = pnand %p275_p13, %p269_p10 }
  0x27   :  { %211 = vmatmul.mubr.msk.bf16.vlgmr.msra.gmra.mxu0 %vm74_vm1, %v50_v5 }
  0xe7   :  { %v112_v7 = vpop.f32.mrf.mxu0 }
  0xe8   :  { %v113_v8 = vadd.f32 %v195_v6, %v112_v7 }
  0xe9   :  { %v212_v9 = vpop.f32.mrf.mxu0 }
  0xea   :  { %v201_v10 = vpack.c.bf16 %v113_v8, %v113_v8 }
  0xeb   :  { %v115_v11 = vpop.f32.mrf.mxu0 }
  0xec   :  { %v116_v12 = vadd.f32 %v195_v6, %v115_v11  ;;  %138 = vrot.lane.b32.xlu1 %v201_v10, %s340_s28  ;;  %130 = vrot.lane.b32.xlu0 %v201_v10, %s345_s9  ;;  %128 = vst.msk [vmem:[#allocation7] sm:$0xf] %vm127_vm2, %v201_v10 }
  0xed   :  { %v213_v13 = vpop.f32.mrf.mxu0 }
  0xee   :  { %v202_v14 = vpack.c.bf16 %v116_v12, %v116_v12 }
  0xf0   :  { %140 = vrot.lane.b32.xlu1 %v202_v14, %s340_s28  ;;  %132 = vrot.lane.b32.xlu0 %v202_v14, %s345_s9  ;;  %129 = vst.msk [vmem:[#allocation7 + $0x4] sm:$0xf] %vm127_vm2, %v202_v14 }
  0xf1   :  { %279 = shalt.err (!%p276_p0)
}
  0xf2   :  { %157 = dma.vmem_to_hbm [thread:$0]  %s152_s8, 128, %s419_s3, [#allocation4], %s340_s28, %s340_s28, %s341_s29  }
  0xf3   :  { %s346_s12 = smov [#allocation8]   ;;  %s347_s14 = smov [#allocation10]  }
  0xf4   :  { %s163_s13 = sshll.u32 %s346_s12, 4  ;;  %s175_s15 = sshll.u32 %s347_s14, 4  ;;  %s164_s13 = int_to_ptr.vmem [resolvable:$true] %s163_s13  ;;  %s176_s15 = int_to_ptr.vmem [resolvable:$true] %s175_s15 }
  0xf5   :  { %s288_s16 = scalar_lea.vmem %s164_s13, 128  ;;  %p293_p2 = scmp.lt.s32.totalorder %s164_s13, %s164_s13 }
  0xf6   :  { %p289_p1 = scmp.ne.s32.totalorder %s164_s13, %s288_s16  ;;  %p294_p3 = scmp.lt.s32.totalorder %s288_s16, %s288_s16 }
  0xf8   :  { %p295_p4 = por %p294_p3, %p293_p2 }
  0xfa   :  { %p296_p5 = pnand %p295_p4, %p289_p1 }
 0x15e   :  { %v139_v15 = vpop.permute.xlu1 %138  ;;  %v131_v16 = vpop.permute.xlu0 %130 }
 0x15f   :  { %144 = vst.msk [vmem:[#allocation10] sm:$0xf] %vm127_vm2, %v139_v15  ;;  %136 = vst.msk [vmem:[#allocation8] sm:$0xf] %vm127_vm2, %v131_v16 }
 0x162   :  { %v141_v17 = vpop.permute.xlu1 %140  ;;  %v133_v18 = vpop.permute.xlu0 %132 }
 0x163   :  { %145 = vst.msk [vmem:[#allocation10 + $0x4] sm:$0xf] %vm127_vm2, %v141_v17  ;;  %137 = vst.msk [vmem:[#allocation8 + $0x4] sm:$0xf] %vm127_vm2, %v133_v18 }
 0x164   :  { %299 = shalt.err (!%p296_p5)
}
 0x165   :  { %169 = dma.vmem_to_hbm [thread:$0]  %s164_s13, 128, %s420_s4, [#allocation9], %s340_s28, %s340_s28, %s341_s29  }
 0x166   :  { %s308_s18 = scalar_lea.vmem %s176_s15, 128  ;;  %p313_p7 = scmp.lt.s32.totalorder %s176_s15, %s176_s15 }
 0x167   :  { %p309_p6 = scmp.ne.s32.totalorder %s176_s15, %s308_s18  ;;  %p314_p8 = scmp.lt.s32.totalorder %s308_s18, %s308_s18 }
 0x169   :  { %p315_p9 = por %p314_p8, %p313_p7 }
 0x16b   :  { %p316_p10 = pnand %p315_p9, %p309_p6 }
 0x16d   :  { %319 = shalt.err (!%p316_p10)
}
 0x16e   :  { %181 = dma.vmem_to_hbm [thread:$0]  %s176_s15, 128, %s421_s5, [#allocation9], %s340_s28, %s340_s28, %s341_s29  }
 0x16f   :  { %332 = dma.done.wait [#allocation4], 128  }
 0x170   :  { %333 = vsyncadd [#allocation4], 4294967168 }
 0x171   :  { %334 = dma.done.wait [#allocation9], 256  }
 0x172   :  { %335 = vsyncadd [#allocation9], 4294967040 }
 0x173   :  { %191 = vsyncpa [#allocation3], 1 }
 0x174   :  { %192 = vsyncpa [#allocation6], 1 }
 0x175   :  { %193 = vsyncpa [#allocation4], 1 }
 0x176   :  { %194 = vsyncpa [#allocation9], 1 }

</bundles_post_ra>
